<compile_context>
chip_gen: v7x
topology: tpu7x:2x2x1
jax: 0.10.0
libtpu: 0.0.40
codegen_flags: <defaults>
</compile_context>

<pallas_src>
import math
import functools

import jax
import jax.numpy as jnp
from jax.experimental import pallas as pl
from jax.experimental.pallas import tpu as pltpu


def _attn_kernel(x_ref, wqkv_ref, bqkv_ref, wo_ref, bo_ref, o_ref,
                 kv_sc, ctx_sc, *, n_heads, d_head, q_tile, causal):
    # Grid = (batch, q_tile); q-tile axis is innermost ("arbitrary") so the K/V
    # scratch computed at qi == 0 is reused by every later tile of the same batch.
    qi = pl.program_id(1)
    cdt = kv_sc.dtype
    S = x_ref.shape[1]
    Sq = q_tile
    dh = d_head

    # ---- K / V projection: once per batch, full-width (S, D) x (D, D) matmuls. ----
    @pl.when(qi == 0)
    def _():
        xf = x_ref[0]                                                     # (S, D)
        k_all = jnp.dot(xf, wqkv_ref[1],
                        preferred_element_type=jnp.float32) + bqkv_ref[1]
        v_all = jnp.dot(xf, wqkv_ref[2],
                        preferred_element_type=jnp.float32) + bqkv_ref[2]
        kv_sc[0] = k_all.astype(cdt)
        kv_sc[1] = v_all.astype(cdt)

    # ---- Q projection for this query tile (1/sqrt(dh) already folded on host). ----
    q0 = pl.multiple_of(qi * Sq, Sq)
    xq = x_ref[0, pl.ds(q0, Sq), :]                                       # (Sq, D)
    q_all = jnp.dot(xq, wqkv_ref[0],
                    preferred_element_type=jnp.float32) + bqkv_ref[0]     # (Sq, D) f32

    # ---- Additive causal mask, built once per (batch, q-tile), reused per head. ----
    if causal:
        rows = jax.lax.broadcasted_iota(jnp.int32, (Sq, S), 0) + q0
        cols = jax.lax.broadcasted_iota(jnp.int32, (Sq, S), 1)
        mask_add = jnp.where(cols > rows, -1e30, 0.0).astype(jnp.float32)

    # ---- Per-head attention. Static slices; context written to column slices. ----
    for h in range(n_heads):
        sl = slice(h * dh, (h + 1) * dh)
        q = q_all[:, sl].astype(cdt)                                      # (Sq, dh)
        k = kv_sc[0, :, sl]                                               # (S, dh)
        v = kv_sc[1, :, sl]                                               # (S, dh)

        # Scores: q @ k^T without materializing a transpose of k.
        s = jax.lax.dot_general(q, k, (((1,), (1,)), ((), ())),
                                preferred_element_type=jnp.float32)       # (Sq, S)
        if causal:
            s = s + mask_add

        # Softmax (stats in f32); normalization via approximate reciprocal (EUP).
        m = jnp.max(s, axis=-1, keepdims=True)
        p = jnp.exp(s - m)
        denom = jnp.sum(p, axis=-1, keepdims=True)
        p = p * pl.reciprocal(denom, approx=True)

        o_h = jnp.dot(p.astype(cdt), v,
                      preferred_element_type=jnp.float32)                 # (Sq, dh)
        ctx_sc[:, sl] = o_h.astype(cdt)

    # ---- One (Sq, D) x (D, D) out-projection + bias for the whole tile. ----
    out = jnp.dot(ctx_sc[...], wo_ref[...],
                  preferred_element_type=jnp.float32) + bo_ref[...]
    o_ref[0] = out.astype(o_ref.dtype)


def _pick_q_tile(S):
    if S <= 512:
        return S
    for t in (512, 256, 128):
        if S % t == 0:
            return t
    return S


def self_attention(x, w_in, b_in, w_out, b_out, *, n_heads, causal=False,
                   compute_dtype=jnp.float32, q_tile=None):
    """Pallas forward matching PyTorch SelfAttention(x, casual_mask=causal).

    x:      (B, S, D)
    w_in:   (3D, D)  PyTorch Linear layout (out_features, in_features)
    b_in:   (3D,)
    w_out:  (D, D)
    b_out:  (D,)
    compute_dtype: dtype of the MXU operands (f32 or bf16); accumulation and
                   softmax statistics are always f32.
    """
    B, S, D = x.shape
    assert D % n_heads == 0
    H = n_heads
    dh = D // n_heads
    scale = 1.0 / math.sqrt(dh)

    Sq = _pick_q_tile(S) if q_tile is None else q_tile
    assert S % Sq == 0
    NQ = S // Sq

    cdt = jnp.dtype(compute_dtype)

    # ---- Host-side relayout (pure layout + constant folding, done once). ----
    # w_qkv[c, i, j] = w_in[c*D + j, i]  -> contraction-ready (D, D) per chunk.
    w_qkv = jnp.transpose(w_in.reshape(3, D, D), (0, 2, 1)).astype(jnp.float32)
    b_qkv = b_in.astype(jnp.float32).reshape(3, 1, D)
    chunk_scale = jnp.array([scale, 1.0, 1.0], dtype=jnp.float32).reshape(3, 1, 1)
    w_qkv = w_qkv * chunk_scale          # fold 1/sqrt(dh) into the Q chunk
    b_qkv = b_qkv * chunk_scale
    w_o = w_out.T.astype(jnp.float32)    # (D, D) contraction-ready
    b_o = b_out.astype(jnp.float32).reshape(1, D)

    x_c = x.astype(cdt)
    w_qkv_c = w_qkv.astype(cdt)
    w_o_c = w_o.astype(cdt)

    # ---- Generation-aware VMEM limit (leave headroom; v7x has only 64 MiB/TC). ----
    try:
        info = pltpu.get_tpu_info()
        vmem_cap = getattr(info, "vmem_capacity_bytes", None) or (64 * 1024 * 1024)
    except Exception:
        vmem_cap = 64 * 1024 * 1024
    vmem_limit = int(vmem_cap * 0.85)

    kernel = functools.partial(_attn_kernel, n_heads=H, d_head=dh,
                               q_tile=Sq, causal=causal)

    return pl.pallas_call(
        kernel,
        out_shape=jax.ShapeDtypeStruct((B, S, D), x.dtype),
        grid_spec=pltpu.PrefetchScalarGridSpec(
            num_scalar_prefetch=0,
            grid=(B, NQ),
            in_specs=[
                pl.BlockSpec((1, S, D), lambda b, qi: (b, 0, 0)),   # x (resident across q tiles)
                pl.BlockSpec((3, D, D), lambda b, qi: (0, 0, 0)),   # qkv weights (grid-resident)
                pl.BlockSpec((3, 1, D), lambda b, qi: (0, 0, 0)),   # qkv biases   (grid-resident)
                pl.BlockSpec((D, D),    lambda b, qi: (0, 0)),      # out-proj weight (W^T)
                pl.BlockSpec((1, D),    lambda b, qi: (0, 0)),      # out-proj bias
            ],
            out_specs=pl.BlockSpec((1, Sq, D), lambda b, qi: (b, qi, 0)),
            scratch_shapes=[
                pltpu.VMEM((2, S, D), cdt),    # K / V projections (per batch)
                pltpu.VMEM((Sq, D), cdt),      # per-tile multi-head context
            ],
        ),
        compiler_params=pltpu.CompilerParams(
            dimension_semantics=("parallel", "arbitrary"),
            vmem_limit_bytes=vmem_limit,
        ),
    )(x_c, w_qkv_c, b_qkv, w_o_c, b_o)


def self_attention_ref(x, w_in, b_in, w_out, b_out, *, n_heads, causal=False):
    """Plain-JAX reference matching the PyTorch forward exactly."""
    B, S, D = x.shape
    d_head = D // n_heads
    qkv = x @ w_in.T + b_in
    Q, K, V = jnp.split(qkv, 3, axis=-1)
    Q = Q.reshape(B, S, n_heads, d_head).transpose(0, 2, 1, 3)
    K = K.reshape(B, S, n_heads, d_head).transpose(0, 2, 1, 3)
    V = V.reshape(B, S, n_heads, d_head).transpose(0, 2, 1, 3)
    w = jnp.einsum("bhqd,bhkd->bhqk", Q, K)
    if causal:
        mask = jnp.triu(jnp.ones((S, S), dtype=bool), k=1)
        w = jnp.where(mask, -jnp.inf, w)
    w = w / math.sqrt(d_head)
    w = jax.nn.softmax(w, axis=-1)
    o = jnp.einsum("bhqk,bhkd->bhqd", w, V)
    o = o.transpose(0, 2, 1, 3).reshape(B, S, D)
    return o @ w_out.T + b_out


if __name__ == "__main__":
    # Small, module-consistent shapes: batch=2, seq=8, d_embed=32, n_heads=4.
    B, S, D, H = 2, 8, 32, 4

    key = jax.random.PRNGKey(0)
    kx, kw1, kb1, kw2, kb2 = jax.random.split(key, 5)

    x = jax.random.normal(kx, (B, S, D), dtype=jnp.float32)
    # PyTorch Linear layout: (out_features, in_features).
    w_in = jax.random.normal(kw1, (3 * D, D), dtype=jnp.float32) * 0.05
    b_in = jax.random.normal(kb1, (3 * D,), dtype=jnp.float32) * 0.05
    w_out = jax.random.normal(kw2, (D, D), dtype=jnp.float32) * 0.05
    b_out = jax.random.normal(kb2, (D,), dtype=jnp.float32) * 0.05

    # f32 path, non-causal.
    out = self_attention(x, w_in, b_in, w_out, b_out, n_heads=H, causal=False)
    out = jax.block_until_ready(out)
    ref = self_attention_ref(x, w_in, b_in, w_out, b_out, n_heads=H, causal=False)
    assert out.shape == (B, S, D)
    # Tolerance accounts for the approximate (EUP) reciprocal in the softmax.
    assert jnp.allclose(out, ref, atol=2e-3, rtol=2e-3), "mismatch vs reference"

    # f32 path, causal mask.
    out_c = self_attention(x, w_in, b_in, w_out, b_out, n_heads=H, causal=True)
    out_c = jax.block_until_ready(out_c)
    ref_c = self_attention_ref(x, w_in, b_in, w_out, b_out, n_heads=H, causal=True)
    assert jnp.allclose(out_c, ref_c, atol=2e-3, rtol=2e-3), "causal mismatch vs reference"

    # bf16-operand path (f32 accumulation): looser tolerance against the f32 reference.
    out_bf = self_attention(x, w_in, b_in, w_out, b_out, n_heads=H, causal=False,
                            compute_dtype=jnp.bfloat16)
    out_bf = jax.block_until_ready(out_bf)
    assert jnp.allclose(out_bf, ref, atol=3e-2, rtol=3e-2), "bf16 mismatch vs reference"

    print("KERNEL_OK")
</pallas_src>

<mosaic_0001>
module attributes {stable_mosaic.version = 11 : i64} {
  func.func @_attn_kernel(%arg0: i32, %arg1: i32, %arg2: memref<1x8x32xf32, #tpu.memory_space<vmem>>, %arg3: memref<3x32x32xf32, #tpu.memory_space<vmem>>, %arg4: memref<3x1x32xf32, #tpu.memory_space<vmem>>, %arg5: memref<32x32xf32, #tpu.memory_space<vmem>>, %arg6: memref<1x32xf32, #tpu.memory_space<vmem>>, %arg7: memref<1x8x32xf32, #tpu.memory_space<vmem>>, %arg8: memref<2x8x32xf32, #tpu.memory_space<vmem>>, %arg9: memref<8x32xf32, #tpu.memory_space<vmem>>) attributes {dimension_semantics = [#tpu.dimension_semantics<parallel>, #tpu.dimension_semantics<arbitrary>], iteration_bounds = array<i64: 2, 1>, scalar_prefetch = 0 : i64, scratch_operands = 2 : i64, tpu.core_type = #tpu.core_type<tc>, window_params = [{transform_indices = @transform_0, window_bounds = array<i64: 1, 8, 32>}, {pipeline_mode = #tpu.pipeline_mode<synchronous>, transform_indices = @transform_1, window_bounds = array<i64: 3, 32, 32>}, {pipeline_mode = #tpu.pipeline_mode<synchronous>, transform_indices = @transform_2, window_bounds = array<i64: 3, 1, 32>}, {pipeline_mode = #tpu.pipeline_mode<synchronous>, transform_indices = @transform_3, window_bounds = array<i64: 32, 32>}, {pipeline_mode = #tpu.pipeline_mode<synchronous>, transform_indices = @transform_4, window_bounds = array<i64: 1, 32>}, {transform_indices = @transform_5, window_bounds = array<i64: 1, 8, 32>}]} {
    %c0_i32 = arith.constant 0 : i32
    %0 = arith.cmpi eq, %arg1, %c0_i32 : i32
    %1 = arith.extui %0 : i1 to i32
    %c0_i32_0 = arith.constant 0 : i32
    %2 = arith.cmpi ne, %1, %c0_i32_0 : i32
    scf.if %2 {
      %c0_62 = arith.constant 0 : index
      %c0_63 = arith.constant 0 : index
      %c0_64 = arith.constant 0 : index
      %96 = vector.load %arg2[%c0_62, %c0_63, %c0_64] : memref<1x8x32xf32, #tpu.memory_space<vmem>>, vector<1x8x32xf32>
      %97 = vector.shape_cast %96 : vector<1x8x32xf32> to vector<8x32xf32>
      %c1_65 = arith.constant 1 : index
      %c0_66 = arith.constant 0 : index
      %c0_67 = arith.constant 0 : index
      %98 = vector.load %arg3[%c1_65, %c0_66, %c0_67] : memref<3x32x32xf32, #tpu.memory_space<vmem>>, vector<1x32x32xf32>
      %99 = vector.shape_cast %98 : vector<1x32x32xf32> to vector<32x32xf32>
      %cst_68 = arith.constant dense<0.000000e+00> : vector<8x32xf32>
      %100 = tpu.matmul %97, %99, %cst_68 {dimension_numbers = #tpu.dot_dimension_numbers<[1], [0], [0], [1], [0, 0, 1, 1], [], []>} : vector<8x32xf32>, vector<32x32xf32>, vector<8x32xf32> -> vector<8x32xf32>
      %c1_69 = arith.constant 1 : index
      %c0_70 = arith.constant 0 : index
      %c0_71 = arith.constant 0 : index
      %101 = vector.load %arg4[%c1_69, %c0_70, %c0_71] : memref<3x1x32xf32, #tpu.memory_space<vmem>>, vector<1x1x32xf32>
      %102 = vector.shape_cast %101 : vector<1x1x32xf32> to vector<1x32xf32>
      %103 = vector.broadcast %102 : vector<1x32xf32> to vector<8x32xf32>
      %104 = arith.addf %100, %103 : vector<8x32xf32>
      %c2 = arith.constant 2 : index
      %c0_72 = arith.constant 0 : index
      %c0_73 = arith.constant 0 : index
      %105 = vector.load %arg3[%c2, %c0_72, %c0_73] : memref<3x32x32xf32, #tpu.memory_space<vmem>>, vector<1x32x32xf32>
      %106 = vector.shape_cast %105 : vector<1x32x32xf32> to vector<32x32xf32>
      %cst_74 = arith.constant dense<0.000000e+00> : vector<8x32xf32>
      %107 = tpu.matmul %97, %106, %cst_74 {dimension_numbers = #tpu.dot_dimension_numbers<[1], [0], [0], [1], [0, 0, 1, 1], [], []>} : vector<8x32xf32>, vector<32x32xf32>, vector<8x32xf32> -> vector<8x32xf32>
      %c2_75 = arith.constant 2 : index
      %c0_76 = arith.constant 0 : index
      %c0_77 = arith.constant 0 : index
      %108 = vector.load %arg4[%c2_75, %c0_76, %c0_77] : memref<3x1x32xf32, #tpu.memory_space<vmem>>, vector<1x1x32xf32>
      %109 = vector.shape_cast %108 : vector<1x1x32xf32> to vector<1x32xf32>
      %110 = vector.broadcast %109 : vector<1x32xf32> to vector<8x32xf32>
      %111 = arith.addf %107, %110 : vector<8x32xf32>
      %c0_78 = arith.constant 0 : index
      %c0_79 = arith.constant 0 : index
      %c0_80 = arith.constant 0 : index
      %112 = vector.load %arg8[%c0_78, %c0_79, %c0_80] : memref<2x8x32xf32, #tpu.memory_space<vmem>>, vector<1x8x32xf32>
      %113 = vector.shape_cast %112 : vector<1x8x32xf32> to vector<8x32xf32>
      %114 = vector.shape_cast %104 : vector<8x32xf32> to vector<1x8x32xf32>
      tpu.vector_store %arg8[%c0_78, %c0_79, %c0_80], %114 {strides = array<i32>} : memref<2x8x32xf32, #tpu.memory_space<vmem>>, vector<1x8x32xf32>,
      %c1_81 = arith.constant 1 : index
      %c0_82 = arith.constant 0 : index
      %c0_83 = arith.constant 0 : index
      %115 = vector.load %arg8[%c1_81, %c0_82, %c0_83] : memref<2x8x32xf32, #tpu.memory_space<vmem>>, vector<1x8x32xf32>
      %116 = vector.shape_cast %115 : vector<1x8x32xf32> to vector<8x32xf32>
      %117 = vector.shape_cast %111 : vector<8x32xf32> to vector<1x8x32xf32>
      tpu.vector_store %arg8[%c1_81, %c0_82, %c0_83], %117 {strides = array<i32>} : memref<2x8x32xf32, #tpu.memory_space<vmem>>, vector<1x8x32xf32>,
    } else {
    }
    %c8_i32 = arith.constant 8 : i32
    %3 = arith.muli %arg1, %c8_i32 : i32
    %4 = tpu.assume_multiple %3, 8 : i32
    %c0 = arith.constant 0 : index
    %5 = arith.index_cast %4 : i32 to index
    %c0_1 = arith.constant 0 : index
    %6 = vector.load %arg2[%c0, %5, %c0_1] : memref<1x8x32xf32, #tpu.memory_space<vmem>>, vector<1x8x32xf32>
    %7 = vector.shape_cast %6 : vector<1x8x32xf32> to vector<8x32xf32>
    %c0_2 = arith.constant 0 : index
    %c0_3 = arith.constant 0 : index
    %c0_4 = arith.constant 0 : index
    %8 = vector.load %arg3[%c0_2, %c0_3, %c0_4] : memref<3x32x32xf32, #tpu.memory_space<vmem>>, vector<1x32x32xf32>
    %9 = vector.shape_cast %8 : vector<1x32x32xf32> to vector<32x32xf32>
    %cst = arith.constant dense<0.000000e+00> : vector<8x32xf32>
    %10 = tpu.matmul %7, %9, %cst {dimension_numbers = #tpu.dot_dimension_numbers<[1], [0], [0], [1], [0, 0, 1, 1], [], []>} : vector<8x32xf32>, vector<32x32xf32>, vector<8x32xf32> -> vector<8x32xf32>
    %c0_5 = arith.constant 0 : index
    %c0_6 = arith.constant 0 : index
    %c0_7 = arith.constant 0 : index
    %11 = vector.load %arg4[%c0_5, %c0_6, %c0_7] : memref<3x1x32xf32, #tpu.memory_space<vmem>>, vector<1x1x32xf32>
    %12 = vector.shape_cast %11 : vector<1x1x32xf32> to vector<1x32xf32>
    %13 = vector.broadcast %12 : vector<1x32xf32> to vector<8x32xf32>
    %14 = arith.addf %10, %13 : vector<8x32xf32>
    %15 = vector.extract_strided_slice %14 {offsets = [0, 0], sizes = [8, 8], strides = [1, 1]} : vector<8x32xf32> to vector<8x8xf32>
    %c0_8 = arith.constant 0 : index
    %c0_9 = arith.constant 0 : index
    %c0_10 = arith.constant 0 : index
    %16 = vector.load %arg8[%c0_8, %c0_9, %c0_10] : memref<2x8x32xf32, #tpu.memory_space<vmem>>, vector<1x8x8xf32>
    %17 = vector.shape_cast %16 : vector<1x8x8xf32> to vector<8x8xf32>
    %c1 = arith.constant 1 : index
    %c0_11 = arith.constant 0 : index
    %c0_12 = arith.constant 0 : index
    %18 = vector.load %arg8[%c1, %c0_11, %c0_12] : memref<2x8x32xf32, #tpu.memory_space<vmem>>, vector<1x8x8xf32>
    %19 = vector.shape_cast %18 : vector<1x8x8xf32> to vector<8x8xf32>
    %cst_13 = arith.constant dense<0.000000e+00> : vector<8x8xf32>
    %20 = tpu.matmul %15, %17, %cst_13 {dimension_numbers = #tpu.dot_dimension_numbers<[1], [1], [0], [0], [0, 0, 1, 0], [], []>} : vector<8x8xf32>, vector<8x8xf32>, vector<8x8xf32> -> vector<8x8xf32>
    %cst_14 = arith.constant dense<0xFF800000> : vector<8xf32>
    %21 = vector.multi_reduction <maximumf>, %20, %cst_14 [1] : vector<8x8xf32> to vector<8xf32>
    %22 = vector.shape_cast %21 : vector<8xf32> to vector<8x1xf32>
    %23 = vector.broadcast %22 : vector<8x1xf32> to vector<8x8xf32>
    %24 = arith.subf %20, %23 : vector<8x8xf32>
    %25 = math.exp %24 : vector<8x8xf32>
    %cst_15 = arith.constant dense<0.000000e+00> : vector<8xf32>
    %26 = vector.multi_reduction <add>, %25, %cst_15 [1] : vector<8x8xf32> to vector<8xf32>
    %27 = vector.shape_cast %26 : vector<8xf32> to vector<8x1xf32>
    %28 = tpu.reciprocal %27 {approx = true} : vector<8x1xf32> -> vector<8x1xf32>
    %29 = vector.broadcast %28 : vector<8x1xf32> to vector<8x8xf32>
    %30 = arith.mulf %25, %29 : vector<8x8xf32>
    %cst_16 = arith.constant dense<0.000000e+00> : vector<8x8xf32>
    %31 = tpu.matmul %30, %19, %cst_16 {dimension_numbers = #tpu.dot_dimension_numbers<[1], [0], [0], [1], [0, 0, 1, 1], [], []>} : vector<8x8xf32>, vector<8x8xf32>, vector<8x8xf32> -> vector<8x8xf32>
    %c0_17 = arith.constant 0 : index
    %c0_18 = arith.constant 0 : index
    %32 = vector.load %arg9[%c0_17, %c0_18] : memref<8x32xf32, #tpu.memory_space<vmem>>, vector<8x8xf32>
    tpu.vector_store %arg9[%c0_17, %c0_18], %31 {strides = array<i32>} : memref<8x32xf32, #tpu.memory_space<vmem>>, vector<8x8xf32>,
    %33 = vector.extract_strided_slice %14 {offsets = [0, 8], sizes = [8, 8], strides = [1, 1]} : vector<8x32xf32> to vector<8x8xf32>
    %c0_19 = arith.constant 0 : index
    %c0_20 = arith.constant 0 : index
    %c8 = arith.constant 8 : index
    %34 = vector.load %arg8[%c0_19, %c0_20, %c8] : memref<2x8x32xf32, #tpu.memory_space<vmem>>, vector<1x8x8xf32>
    %35 = vector.shape_cast %34 : vector<1x8x8xf32> to vector<8x8xf32>
    %c1_21 = arith.constant 1 : index
    %c0_22 = arith.constant 0 : index
    %c8_23 = arith.constant 8 : index
    %36 = vector.load %arg8[%c1_21, %c0_22, %c8_23] : memref<2x8x32xf32, #tpu.memory_space<vmem>>, vector<1x8x8xf32>
    %37 = vector.shape_cast %36 : vector<1x8x8xf32> to vector<8x8xf32>
    %cst_24 = arith.constant dense<0.000000e+00> : vector<8x8xf32>
    %38 = tpu.matmul %33, %35, %cst_24 {dimension_numbers = #tpu.dot_dimension_numbers<[1], [1], [0], [0], [0, 0, 1, 0], [], []>} : vector<8x8xf32>, vector<8x8xf32>, vector<8x8xf32> -> vector<8x8xf32>
    %cst_25 = arith.constant dense<0xFF800000> : vector<8xf32>
    %39 = vector.multi_reduction <maximumf>, %38, %cst_25 [1] : vector<8x8xf32> to vector<8xf32>
    %40 = vector.shape_cast %39 : vector<8xf32> to vector<8x1xf32>
    %41 = vector.broadcast %40 : vector<8x1xf32> to vector<8x8xf32>
    %42 = arith.subf %38, %41 : vector<8x8xf32>
    %43 = math.exp %42 : vector<8x8xf32>
    %cst_26 = arith.constant dense<0.000000e+00> : vector<8xf32>
    %44 = vector.multi_reduction <add>, %43, %cst_26 [1] : vector<8x8xf32> to vector<8xf32>
    %45 = vector.shape_cast %44 : vector<8xf32> to vector<8x1xf32>
    %46 = tpu.reciprocal %45 {approx = true} : vector<8x1xf32> -> vector<8x1xf32>
    %47 = vector.broadcast %46 : vector<8x1xf32> to vector<8x8xf32>
    %48 = arith.mulf %43, %47 : vector<8x8xf32>
    %cst_27 = arith.constant dense<0.000000e+00> : vector<8x8xf32>
    %49 = tpu.matmul %48, %37, %cst_27 {dimension_numbers = #tpu.dot_dimension_numbers<[1], [0], [0], [1], [0, 0, 1, 1], [], []>} : vector<8x8xf32>, vector<8x8xf32>, vector<8x8xf32> -> vector<8x8xf32>
    %c0_28 = arith.constant 0 : index
    %c8_29 = arith.constant 8 : index
    %50 = vector.load %arg9[%c0_28, %c8_29] : memref<8x32xf32, #tpu.memory_space<vmem>>, vector<8x8xf32>
    tpu.vector_store %arg9[%c0_28, %c8_29], %49 {strides = array<i32>} : memref<8x32xf32, #tpu.memory_space<vmem>>, vector<8x8xf32>,
    %51 = vector.extract_strided_slice %14 {offsets = [0, 16], sizes = [8, 8], strides = [1, 1]} : vector<8x32xf32> to vector<8x8xf32>
    %c0_30 = arith.constant 0 : index
    %c0_31 = arith.constant 0 : index
    %c16 = arith.constant 16 : index
    %52 = vector.load %arg8[%c0_30, %c0_31, %c16] : memref<2x8x32xf32, #tpu.memory_space<vmem>>, vector<1x8x8xf32>
    %53 = vector.shape_cast %52 : vector<1x8x8xf32> to vector<8x8xf32>
    %c1_32 = arith.constant 1 : index
    %c0_33 = arith.constant 0 : index
    %c16_34 = arith.constant 16 : index
    %54 = vector.load %arg8[%c1_32, %c0_33, %c16_34] : memref<2x8x32xf32, #tpu.memory_space<vmem>>, vector<1x8x8xf32>
    %55 = vector.shape_cast %54 : vector<1x8x8xf32> to vector<8x8xf32>
    %cst_35 = arith.constant dense<0.000000e+00> : vector<8x8xf32>
    %56 = tpu.matmul %51, %53, %cst_35 {dimension_numbers = #tpu.dot_dimension_numbers<[1], [1], [0], [0], [0, 0, 1, 0], [], []>} : vector<8x8xf32>, vector<8x8xf32>, vector<8x8xf32> -> vector<8x8xf32>
    %cst_36 = arith.constant dense<0xFF800000> : vector<8xf32>
    %57 = vector.multi_reduction <maximumf>, %56, %cst_36 [1] : vector<8x8xf32> to vector<8xf32>
    %58 = vector.shape_cast %57 : vector<8xf32> to vector<8x1xf32>
    %59 = vector.broadcast %58 : vector<8x1xf32> to vector<8x8xf32>
    %60 = arith.subf %56, %59 : vector<8x8xf32>
    %61 = math.exp %60 : vector<8x8xf32>
    %cst_37 = arith.constant dense<0.000000e+00> : vector<8xf32>
    %62 = vector.multi_reduction <add>, %61, %cst_37 [1] : vector<8x8xf32> to vector<8xf32>
    %63 = vector.shape_cast %62 : vector<8xf32> to vector<8x1xf32>
    %64 = tpu.reciprocal %63 {approx = true} : vector<8x1xf32> -> vector<8x1xf32>
    %65 = vector.broadcast %64 : vector<8x1xf32> to vector<8x8xf32>
    %66 = arith.mulf %61, %65 : vector<8x8xf32>
    %cst_38 = arith.constant dense<0.000000e+00> : vector<8x8xf32>
    %67 = tpu.matmul %66, %55, %cst_38 {dimension_numbers = #tpu.dot_dimension_numbers<[1], [0], [0], [1], [0, 0, 1, 1], [], []>} : vector<8x8xf32>, vector<8x8xf32>, vector<8x8xf32> -> vector<8x8xf32>
    %c0_39 = arith.constant 0 : index
    %c16_40 = arith.constant 16 : index
    %68 = vector.load %arg9[%c0_39, %c16_40] : memref<8x32xf32, #tpu.memory_space<vmem>>, vector<8x8xf32>
    tpu.vector_store %arg9[%c0_39, %c16_40], %67 {strides = array<i32>} : memref<8x32xf32, #tpu.memory_space<vmem>>, vector<8x8xf32>,
    %69 = vector.extract_strided_slice %14 {offsets = [0, 24], sizes = [8, 8], strides = [1, 1]} : vector<8x32xf32> to vector<8x8xf32>
    %c0_41 = arith.constant 0 : index
    %c0_42 = arith.constant 0 : index
    %c24 = arith.constant 24 : index
    %70 = vector.load %arg8[%c0_41, %c0_42, %c24] : memref<2x8x32xf32, #tpu.memory_space<vmem>>, vector<1x8x8xf32>
    %71 = vector.shape_cast %70 : vector<1x8x8xf32> to vector<8x8xf32>
    %c1_43 = arith.constant 1 : index
    %c0_44 = arith.constant 0 : index
    %c24_45 = arith.constant 24 : index
    %72 = vector.load %arg8[%c1_43, %c0_44, %c24_45] : memref<2x8x32xf32, #tpu.memory_space<vmem>>, vector<1x8x8xf32>
    %73 = vector.shape_cast %72 : vector<1x8x8xf32> to vector<8x8xf32>
    %cst_46 = arith.constant dense<0.000000e+00> : vector<8x8xf32>
    %74 = tpu.matmul %69, %71, %cst_46 {dimension_numbers = #tpu.dot_dimension_numbers<[1], [1], [0], [0], [0, 0, 1, 0], [], []>} : vector<8x8xf32>, vector<8x8xf32>, vector<8x8xf32> -> vector<8x8xf32>
    %cst_47 = arith.constant dense<0xFF800000> : vector<8xf32>
    %75 = vector.multi_reduction <maximumf>, %74, %cst_47 [1] : vector<8x8xf32> to vector<8xf32>
    %76 = vector.shape_cast %75 : vector<8xf32> to vector<8x1xf32>
    %77 = vector.broadcast %76 : vector<8x1xf32> to vector<8x8xf32>
    %78 = arith.subf %74, %77 : vector<8x8xf32>
    %79 = math.exp %78 : vector<8x8xf32>
    %cst_48 = arith.constant dense<0.000000e+00> : vector<8xf32>
    %80 = vector.multi_reduction <add>, %79, %cst_48 [1] : vector<8x8xf32> to vector<8xf32>
    %81 = vector.shape_cast %80 : vector<8xf32> to vector<8x1xf32>
    %82 = tpu.reciprocal %81 {approx = true} : vector<8x1xf32> -> vector<8x1xf32>
    %83 = vector.broadcast %82 : vector<8x1xf32> to vector<8x8xf32>
    %84 = arith.mulf %79, %83 : vector<8x8xf32>
    %cst_49 = arith.constant dense<0.000000e+00> : vector<8x8xf32>
    %85 = tpu.matmul %84, %73, %cst_49 {dimension_numbers = #tpu.dot_dimension_numbers<[1], [0], [0], [1], [0, 0, 1, 1], [], []>} : vector<8x8xf32>, vector<8x8xf32>, vector<8x8xf32> -> vector<8x8xf32>
    %c0_50 = arith.constant 0 : index
    %c24_51 = arith.constant 24 : index
    %86 = vector.load %arg9[%c0_50, %c24_51] : memref<8x32xf32, #tpu.memory_space<vmem>>, vector<8x8xf32>
    tpu.vector_store %arg9[%c0_50, %c24_51], %85 {strides = array<i32>} : memref<8x32xf32, #tpu.memory_space<vmem>>, vector<8x8xf32>,
    %c0_52 = arith.constant 0 : index
    %c0_53 = arith.constant 0 : index
    %87 = vector.load %arg9[%c0_52, %c0_53] : memref<8x32xf32, #tpu.memory_space<vmem>>, vector<8x32xf32>
    %c0_54 = arith.constant 0 : index
    %c0_55 = arith.constant 0 : index
    %88 = vector.load %arg5[%c0_54, %c0_55] : memref<32x32xf32, #tpu.memory_space<vmem>>, vector<32x32xf32>
    %cst_56 = arith.constant dense<0.000000e+00> : vector<8x32xf32>
    %89 = tpu.matmul %87, %88, %cst_56 {dimension_numbers = #tpu.dot_dimension_numbers<[1], [0], [0], [1], [0, 0, 1, 1], [], []>} : vector<8x32xf32>, vector<32x32xf32>, vector<8x32xf32> -> vector<8x32xf32>
    %c0_57 = arith.constant 0 : index
    %c0_58 = arith.constant 0 : index
    %90 = vector.load %arg6[%c0_57, %c0_58] : memref<1x32xf32, #tpu.memory_space<vmem>>, vector<1x32xf32>
    %91 = vector.broadcast %90 : vector<1x32xf32> to vector<8x32xf32>
    %92 = arith.addf %89, %91 : vector<8x32xf32>
    %c0_59 = arith.constant 0 : index
    %c0_60 = arith.constant 0 : index
    %c0_61 = arith.constant 0 : index
    %93 = vector.load %arg7[%c0_59, %c0_60, %c0_61] : memref<1x8x32xf32, #tpu.memory_space<vmem>>, vector<1x8x32xf32>
    %94 = vector.shape_cast %93 : vector<1x8x32xf32> to vector<8x32xf32>
    %95 = vector.shape_cast %92 : vector<8x32xf32> to vector<1x8x32xf32>
    tpu.vector_store %arg7[%c0_59, %c0_60, %c0_61], %95 {strides = array<i32>} : memref<1x8x32xf32, #tpu.memory_space<vmem>>, vector<1x8x32xf32>,
    return
  }
  func.func @transform_0(%arg0: i32, %arg1: i32) -> (i32, i32, i32) {
    %c0_i32 = arith.constant 0 : i32
    %c0_i32_0 = arith.constant 0 : i32
    %c0_i32_1 = arith.constant 0 : i32
    return %arg0, %c0_i32, %c0_i32_0 : i32, i32, i32
  }
  func.func @transform_1(%arg0: i32, %arg1: i32) -> (i32, i32, i32) {
    %c0_i32 = arith.constant 0 : i32
    %c0_i32_0 = arith.constant 0 : i32
    %c0_i32_1 = arith.constant 0 : i32
    %c0_i32_2 = arith.constant 0 : i32
    return %c0_i32, %c0_i32_0, %c0_i32_1 : i32, i32, i32
  }
  func.func @transform_2(%arg0: i32, %arg1: i32) -> (i32, i32, i32) {
    %c0_i32 = arith.constant 0 : i32
    %c0_i32_0 = arith.constant 0 : i32
    %c0_i32_1 = arith.constant 0 : i32
    %c0_i32_2 = arith.constant 0 : i32
    return %c0_i32, %c0_i32_0, %c0_i32_1 : i32, i32, i32
  }
  func.func @transform_3(%arg0: i32, %arg1: i32) -> (i32, i32) {
    %c0_i32 = arith.constant 0 : i32
    %c0_i32_0 = arith.constant 0 : i32
    %c0_i32_1 = arith.constant 0 : i32
    return %c0_i32, %c0_i32_0 : i32, i32
  }
  func.func @transform_4(%arg0: i32, %arg1: i32) -> (i32, i32) {
    %c0_i32 = arith.constant 0 : i32
    %c0_i32_0 = arith.constant 0 : i32
    %c0_i32_1 = arith.constant 0 : i32
    return %c0_i32, %c0_i32_0 : i32, i32
  }
  func.func @transform_5(%arg0: i32, %arg1: i32) -> (i32, i32, i32) {
    %c0_i32 = arith.constant 0 : i32
    %c0_i32_0 = arith.constant 0 : i32
    return %arg0, %arg1, %c0_i32 : i32, i32, i32
  }
}

</mosaic_0001>

<bundles_post_ra>
// kernel: tpu_custom_call.1
= control target key start
LH: loop header
LB: loop body
LE: loop exit
PB: predicated region body
PF: predicated region fallthrough
CT: control target
= control target key end

     0   :  { %10 = vsyncpa [#allocation5], 0  ;;  %s2301_s0 = inlined_call_operand.hbm [shape: f32[2,8,32], index: 0, kind: input, shape index: {}]   ;;  %s2302_s1 = inlined_call_operand.hbm [shape: f32[3,32,32], index: 1, kind: input, shape index: {}]   ;;  %s2303_s2 = inlined_call_operand.vmem [shape: f32[3,1,32], index: 2, kind: input, shape index: {}]   ;;  %s2304_s3 = inlined_call_operand.hbm [shape: f32[32,32], index: 3, kind: input, shape index: {}]   ;;  %s2305_s4 = inlined_call_operand.vmem [shape: f32[1,32], index: 4, kind: input, shape index: {}]   ;;  %s2306_s5 = inlined_call_operand.hbm [shape: f32[2,8,32], index: 5, kind: output, shape index: {}]  }
   0x1   :  { %12 = vsyncpa [#allocation5 + $0x1], 0 }
   0x2   :  { %13 = vsyncpa [#allocation8], 0 }
   0x3   :  { %14 = vsyncpa [#allocation6], 0 }
   0x4   :  { %16 = vsyncpa [#allocation6 + $0x1], 0  ;;  %s1952_s18 = smov 0   ;;  %s1954_s19 = smov 0  }
   0x5   :  { %s1956_s20 = smov 0   ;;  %s1958_s21 = smov 0  }
   0x6   :  { %s1960_s22 = smov 0   ;;  %s1962_s23 = smov 0  }
   0x7 LB: > { %s1440_s24 = sadd.s32 4294967295, %s1905_s23   ;;  %s1441_s25 = sadd.s32 4294967294, %s1905_s23   ;;  %s1905_s23 = sphi %s1962_s23, %s22_s23   ;;  %s1901_s22 = sphi %s1960_s22, %s2328_s22   ;;  %s1897_s21 = sphi %s1958_s21, %s2327_s21   ;;  %s1893_s20 = sphi %s1956_s20, %s2326_s20   ;;  %s1889_s19 = sphi %s1954_s19, %s2325_s19   ;;  %s1885_s18 = sphi %s1952_s18, %s2324_s18  }
   0x8   : > { %p54_p0 = scmp.ne.s32.totalorder %s1889_s19, %s1885_s18  ;;  %p1986_p1 = scmp.eq.s32.totalorder %s1440_s24, 0 }
   0x9   : > { %p1990_p2 = scmp.eq.s32.totalorder %s1440_s24, 1  ;;  %p170_p3 = scmp.eq.s32.totalorder %s1441_s25, 1 }
   0xa   : > { %s2311_s26 = scalar_select %p1986_p1, 1, 0 }
   0xb   : > { %p1996_p4 = por %p1986_p1, %p54_p0  ;;  %p1442_p5 = scmp.ge.s32.totalorder %s1905_s23, 1 }
   0xc   : > { %p2001_p6 = por %p170_p3, %p54_p0  ;;  %p177_p7 = scmp.lt.s32.totalorder %s1905_s23, 3 }
   0xd   : > { %s2313_s28 = scalar_select %p1996_p4, 1, 0 }
   0xe   : > { %s2314_s29 = scalar_select %p2001_p6, 1, 0 }
   0xf   : > { %p2006_p8 = pnand %p1442_p5, %p177_p7  ;;  %s1907_s6 = smov [#allocation7]  }
  0x10   : > { %s189_s7 = sshll.u32 %s1907_s6, 4  ;;  %s1908_s9 = smov [#allocation9]   ;;  %s2010_s7 = int_to_ptr.vmem [resolvable:$true] %s189_s7 }
  0x11   : > { %p1635_p9 = pneg %p2006_p8  ;;  %s205_s10 = sshll.u32 %s1908_s9, 4  ;;  %s2021_s10 = int_to_ptr.vmem [resolvable:$true] %s205_s10 }
  0x12   : > { %s1733_s13 = scalar_lea.hbm %s2302_s1, 1536 }
  0x13   : > { %p2017_p11 = pnand %p1635_p9, %p1986_p1  ;;  %p1734_p12 = scmp.ne.s32.totalorder %s2302_s1, %s1733_s13 }
  0x14   : > { %p1740_p5 = scmp.lt.u32.totalorder %s1733_s13, %s2302_s1 }
  0x15   : > { %p1735_p13 = pneg %p2017_p11 }
  0x17   : > { %p1736_p0 = pnand %p1735_p13, %p1734_p12 }
  0x19   : > { %p1737_p3 = pneg %p1736_p0 }
  0x1b   : > { %p1742_p7 = pnand %p1740_p5, %p1737_p3 }
  0x1d   : > { %1745 = shalt.err (!%p1742_p7)
}
  0x1e   : > { %s1746_s24 = scalar_lea.vmem %s2010_s7, 1536  ;;  %p1754_p1 = scmp.lt.s32.totalorder %s2010_s7, %s2010_s7 }
  0x1f   : > { %p1747_p9 = scmp.ne.s32.totalorder %s2010_s7, %s1746_s24  ;;  %p1755_p12 = scmp.lt.s32.totalorder %s1746_s24, %s1746_s24 }
  0x21   : > { %p1749_p10 = pnand %p1747_p9, %p1735_p13  ;;  %p1756_p0 = por %p1755_p12, %p1754_p1 }
  0x23   : > { %p1750_p6 = pneg %p1749_p10 }
  0x25   : > { %p1757_p4 = pnand %p1756_p0, %p1750_p6 }
  0x27   : > { %1760 = shalt.err (!%p1757_p4)
}
  0x28   : > { %s1909_s25 = smov 128   ;;  %s1910_s6 = smov 8  }
  0x29   : > { %1638 = dma.hbm_to_vmem [thread:$0]  (!%p2017_p11), %s2302_s1, 1536, %s2010_s7, [#allocation8], %s1909_s25, %s1909_s25, %s1910_s6  }
  0x2a   : > { %s1761_s14 = scalar_lea.hbm %s2304_s3, 512 }
  0x2b   : > { %p1762_p1 = scmp.ne.s32.totalorder %s2304_s3, %s1761_s14  ;;  %p1768_p10 = scmp.lt.u32.totalorder %s1761_s14, %s2304_s3 }
  0x2d   : > { %p1764_p4 = pnand %p1762_p1, %p1735_p13 }
  0x2f   : > { %p1765_p6 = pneg %p1764_p4 }
  0x31   : > { %p1770_p3 = pnand %p1768_p10, %p1765_p6 }
  0x33   : > { %1773 = shalt.err (!%p1770_p3)
}
  0x34   : > { %s1774_s7 = scalar_lea.vmem %s2021_s10, 512  ;;  %p1782_p12 = scmp.lt.s32.totalorder %s2021_s10, %s2021_s10 }
  0x35   : > { %p1775_p5 = scmp.ne.s32.totalorder %s2021_s10, %s1774_s7  ;;  %p1783_p0 = scmp.lt.s32.totalorder %s1774_s7, %s1774_s7 }
  0x37   : > { %p1777_p7 = pnand %p1775_p5, %p1735_p13  ;;  %p1784_p1 = por %p1783_p0, %p1782_p12 }
  0x39   : > { %p1778_p9 = pneg %p1777_p7 }
  0x3b   : > { %p1785_p4 = pnand %p1784_p1, %p1778_p9 }
  0x3d   : > { %1788 = shalt.err (!%p1785_p4)
}
  0x3e   : > { %1641 = dma.hbm_to_vmem [thread:$0]  (!%p2017_p11), %s2304_s3, 512, %s2021_s10, [#allocation8], %s1909_s25, %s1909_s25, %s1910_s6  }
  0x3f   : > { %s34_s12 = sadd.s32 1, %s1901_s22  ;;  %s41_s13 = sadd.s32 1, %s1893_s20 }
  0x40   : > { %p36_p13 = scmp.ge.s32.totalorder %s34_s12, 2  ;;  %p48_p6 = scmp.ne.s32.totalorder %s1893_s20, %s1889_s19 }
  0x41   : > { %p49_p10 = scmp.eq.s32.totalorder %s1905_s23, 0  ;;  %p1652_p3 = scmp.lt.s32.totalorder %s1905_s23, 2 }
  0x42   : > { %s2330_s12 = smov (%p36_p13, %s34_s12), 0  ;;  %p2085_p7 = por %p1990_p2, %p48_p6 }
  0x43   : > { %p50_p5 = por %p49_p10, %p48_p6  ;;  %s38_s14 = ssub.s32 %s1901_s22, %s2330_s12 }
  0x44   : > { %s2317_s8 = scalar_select %p2085_p7, 1, 0 }
  0x45   : > { %s222_s15 = sand.u32 1, %s1893_s20   ;;  %p39_p9 = scmp.eq.s32.totalorder %s38_s14, 0 }
  0x46   : > { %s1446_s10 = sshll.u32 %s222_s15, 3  ;;  %s1447_s25 = sshll.u32 %s1901_s22, 7 }
  0x47   : > { %s2094_s6 = scalar_select %p39_p9, %s1893_s20, %s41_s13  }
  0x48   : > { %s2099_s24 = scalar_lea.hbm %s2301_s0, %s1447_s25  ;;  %s226_s27 = scalar_lea.vmem [#allocation4], %s1446_s10 }
  0x49   : > { %s233_s7 = sshll.u32 %s226_s27, 4  ;;  %p2103_p2 = pnand %p1652_p3, %p50_p5  ;;  %s2107_s7 = int_to_ptr.vmem [resolvable:$true] %s233_s7 }
  0x4a   : > { %s223_s11 = scalar_lea.sflag [#allocation5], %s222_s15  ;;  %s1789_s13 = scalar_lea.hbm %s2099_s24, 128 }
  0x4b   : > { %p1790_p11 = scmp.ne.s32.totalorder %s2099_s24, %s1789_s13  ;;  %p1791_p12 = pneg %p2103_p2 }
  0x4c   : > { %s1794_s25 = scalar_lea.hbm %s2301_s0, 256  ;;  %p1795_p4 = scmp.lt.u32.totalorder %s2099_s24, %s2301_s0 }
  0x4d   : > { %p1792_p0 = pnand %p1791_p12, %p1790_p11  ;;  %p1796_p13 = scmp.lt.u32.totalorder %s1794_s25, %s1789_s13 }
  0x4e   : > { %p1798_p10 = scmp.lt.u32.totalorder %s1789_s13, %s2099_s24 }
  0x4f   : > { %p1793_p1 = pneg %p1792_p0  ;;  %p1797_p6 = por %p1796_p13, %p1795_p4 }
  0x51   : > { %p1799_p3 = por %p1798_p10, %p1797_p6 }
  0x53   : > { %p1800_p5 = pnand %p1799_p3, %p1793_p1 }
  0x55   : > { %1803 = shalt.err (!%p1800_p5)
}
  0x56   : > { %s1804_s15 = scalar_lea.vmem %s2107_s7, 128  ;;  %s1911_s27 = smov [#allocation4]  }
  0x57   : > { %p1805_p9 = scmp.ne.s32.totalorder %s2107_s7, %s1804_s15  ;;  %s1809_s14 = sshll.u32 %s1911_s27, 4  ;;  %s1810_s14 = int_to_ptr.vmem [resolvable:$false] %s1809_s14 }
  0x58   : > { %s1811_s10 = scalar_lea.vmem %s1810_s14, 256  ;;  %p1812_p7 = scmp.lt.s32.totalorder %s2107_s7, %s1810_s14 }
  0x59   : > { %p1807_p11 = pnand %p1805_p9, %p1791_p12  ;;  %p1813_p4 = scmp.lt.s32.totalorder %s1811_s10, %s1804_s15 }
  0x5b   : > { %p1808_p0 = pneg %p1807_p11  ;;  %p1814_p13 = por %p1813_p4, %p1812_p7 }
  0x5d   : > { %p1815_p6 = pnand %p1814_p13, %p1808_p0 }
  0x5f   : > { %1818 = shalt.err (!%p1815_p6)
}
  0x60   : > { %1645 = dma.hbm_to_vmem [thread:$0]  (!%p2103_p2), %s2099_s24, 128, %s2107_s7, %s223_s11  }
  0x61   : > { %242 = sbr.rel (%p2006_p8) target bundleno = 2028 (0x7ec), region = 40  ;;  %s2137_s13 = sand.u32 (!%p2006_p8), 1, %s1889_s19  }
  0x62   : > { %s1449_s25 = sshll.u32 (!%p2006_p8), %s2137_s13, 3  ;;  %s245_s16 = scalar_lea.sflag (!%p2006_p8), [#allocation5], %s2137_s13 }
  0x63   : > { %s248_s17 = scalar_lea.vmem (!%p2006_p8), [#allocation4], %s1449_s25  ;;  %p2319_p7 = scmp.ne.s32.totalorder (!%p2006_p8), %s2313_s28, 0 }
  0x68   : > { %1872 = dma.done.wait (%p2319_p7), %s245_s16, 128  }
  0x69   : > { %1874 = vsyncadd (%p2319_p7), %s245_s16, 4294967168  ;;  %p2320_p2 = scmp.ne.s32.totalorder %s2311_s26, 0 }
  0x6b   : > { %1876 = dma.done.wait (%p2320_p2), [#allocation8], 2048  }
  0x6c   : > { %1878 = vsyncadd (%p2320_p2), [#allocation8], 4294965248  ;;  %v1912_v0 = vmov 0.0|0.0   ;;  %vm1913_vm0 = vmmov 0   ;;  %v1914_v1 = vmov 0.0   ;;  %v289_v2 = vld [vmem:[#allocation7 + $0x20] sm:$0xff] }
  0x6d   : > { %1599 = vmatprep.subr.bf16.mxu0 %v1912_v0  ;;  %1523 = vmatprep.mubr.msk.f32.mxu0 %vm1913_vm0, %v1914_v1  ;;  %v290_v3 = vld [vmem:[#allocation7 + $0x28] sm:$0xff]  ;;  %v291_v4 = vld [vmem:[#allocation7 + $0x30] sm:$0xff]  ;;  %v292_v6 = vld [vmem:[#allocation7 + $0x38] sm:$0xff]  ;;  %vm301_vm1 = vcmask 261120   ;;  %vm552_vm2 = vcmask 64512   ;;  %s1915_s7 = smov 120  }
  0x6e   : > { %1605 = vmatprep.subr.bf16.mxu1 %v1912_v0  ;;  %1534 = vmatprep.mubr.msk.f32.mxu1 %vm1913_vm0, %v1914_v1  ;;  %v1600_v5 = vpack.c.bf16 %v290_v3, %v289_v2  ;;  %v1603_v7 = vpack.c.bf16 %v292_v6, %v291_v4  ;;  %v376_v8 = vld [vmem:[#allocation7 + $0x40] sm:$0xff]  ;;  %v377_v9 = vld [vmem:[#allocation7 + $0x48] sm:$0xff]  ;;  %v287_v13 = vld [vmem:[%s248_s17] sm:$0xff]  ;;  %s1916_s9 = smov 112   ;;  %s1917_s11 = smov 104   ;;  %vm887_vm3 = vcmask 130112  }
  0x6f   : > { %v464_v10 = vld [vmem:[#allocation7] sm:$0xff]  ;;  %v465_v11 = vld [vmem:[#allocation7 + $0x8] sm:$0xff]  ;;  %v1606_v12 = vpack.c.bf16 %v377_v9, %v376_v8  ;;  %v466_v15 = vld [vmem:[#allocation7 + $0x10] sm:$0xff]  ;;  %s1918_s14 = smov 8   ;;  %s1919_s10 = smov 16   ;;  %vm1062_vm4 = vcmask 195712  }
  0x70   : > { %1601 = vmatpush3.bf16.msra.mxu0 %v1600_v5  ;;  %v1612_v14 = vpack.c.bf16 %v465_v11, %v464_v10  ;;  %v467_v16 = vld [vmem:[#allocation7 + $0x18] sm:$0xff]  ;;  %v378_v18 = vld [vmem:[#allocation7 + $0x50] sm:$0xff]  ;;  %s1920_s16 = smov 24   ;;  %vm1237_vm5 = vcmask 261312   ;;  %s1476_s28 = sshll.u32 %s1897_s21, 7 }
  0x71   : > { %1602 = vmatprep.subr.bf16.mxu0 %v1912_v0  ;;  %1607 = vmatpush3.bf16.msra.mxu1 %v1606_v12  ;;  %v1615_v17 = vpack.c.bf16 %v467_v16, %v466_v15  ;;  %v379_v19 = vld [vmem:[#allocation7 + $0x58] sm:$0xff]  ;;  %s282_s30 = scalar_lea.vmem [#allocation10], %s1449_s25  ;;  %s1326_s15 = scalar_lea.sflag [#allocation6], %s2137_s13 }
  0x72   : > { %1608 = vmatprep.subr.bf16.mxu1 %v1912_v0  ;;  %v1609_v20 = vpack.c.bf16 %v379_v19, %v378_v18  ;;  %v1454_v21 = vld [vmem:[%s2303_s2 + $0x1] ss:$0 sm:$0xff]  ;;  %v1459_v25 = vld [vmem:[%s2303_s2] ss:$0 sm:$0xff]  ;;  %v1457_v30 = vld [vmem:[%s2303_s2 + $0x2] ss:$0 sm:$0xff] }
  0x73   : > { %s1340_s24 = sshll.u32 %s282_s30, 4  ;;  %p2321_p12 = scmp.ne.s32.totalorder %s2317_s8, 0  ;;  %s2253_s24 = int_to_ptr.vmem [resolvable:$true] %s1340_s24 }
  0x74   : > { %1604 = vmatpush3.bf16.msra.mxu0 %v1603_v7  ;;  %s1819_s21 = scalar_lea.vmem %s2253_s24, 128  ;;  %s1921_s25 = smov [#allocation10]  }
  0x75   : > { %1611 = vmatprep.subr.bf16.mxu0 %v1912_v0  ;;  %1610 = vmatpush3.bf16.msra.mxu1 %v1609_v20  ;;  %p1820_p8 = scmp.ne.s32.totalorder %s2253_s24, %s1819_s21  ;;  %s1823_s27 = sshll.u32 %s1921_s25, 4  ;;  %s1824_s27 = int_to_ptr.vmem [resolvable:$false] %s1823_s27 }
  0x76   : > { %1548 = vmatprep.subr.mxu1 %v1914_v1  ;;  %p1826_p3 = scmp.lt.s32.totalorder %s2253_s24, %s1824_s27 }
  0x77   : > { %1524 = vmatmul.mubr.msk.f32.vlgmr.msra.gmra.mrb[0].mxu0 %vm301_vm1, %v287_v13  ;;  %p1821_p1 = pnand %p1820_p8, %p2321_p12 }
  0x78   : > { %1613 = vmatpush3.bf16.msra.mxu0 %v1612_v14  ;;  %1545 = vmatprep.mubr.msk.f32.mxu0 %vm1913_vm0, %v1914_v1 }
  0x79   : > { %1614 = vmatprep.subr.bf16.mxu0 %v1912_v0  ;;  %1535 = vmatmul.mubr.msk.f32.vlgmr.msra.gmra.mrb[0].mxu1 %vm301_vm1, %v287_v13  ;;  %p1822_p10 = pneg %p1821_p1 }
  0x7a   : > { %1550 = vmatprep.mubr.msk.f32.mxu1 %vm1913_vm0, %v1914_v1 }
  0x7c   : > { %1616 = vmatpush3.bf16.msra.mxu0 %v1615_v17 }
  0x7d   : > { %1568 = vmatprep.subr.mxu0 %v1914_v1 }
  0x7f   : > { %1546 = vmatmul.mubr.msk.f32.vlgmr.msra.gmra.mrb[2].mxu0 %vm301_vm1, %v287_v13 }
  0x80   : > { %1570 = vmatprep.mubr.msk.f32.mxu0 %vm1913_vm0, %v1914_v1 }
 0x14a   : > { %v371_v22 = vpop.f32.mrb[0].mxu0 }
 0x14b   : > { %v372_v23 = vadd.f32 %v1454_v21, %v371_v22  ;;  %v1525_v24 = vpop.f32.mrb[1].mxu0 }
 0x14c   : > { %v454_v31 = vpop.f32.mrb[0].mxu1 }
 0x14d   : > { %458 = vst.msk [vmem:[#allocation2] sm:$0xff] %vm301_vm1, %v372_v23  ;;  %v455_v32 = vadd.f32 %v1457_v30, %v454_v31  ;;  %v1536_v33 = vpop.f32.mrb[1].mxu1  ;;  %v1242_v31 = vld [vmem:[#allocation9 + $0x10] sm:$0xff] }
 0x14f   : > { %460 = vst.msk [vmem:[#allocation2 + $0x8] sm:$0xff] %vm301_vm1, %v455_v32  ;;  %v1243_v32 = vld [vmem:[#allocation9 + $0x18] sm:$0xff] }
 0x150   : > { %v1621_v33 = vpack.c.bf16 %v1243_v32, %v1242_v31 }
 0x152   : > { %v545_v26 = vpop.f32.mrb[2].mxu0 }
 0x153   : > { %v1547_v27 = vpop.f32.mrb[3].mxu0  ;;  %v546_v29 = vadd.f32 %v1459_v25, %v545_v26 }
 0x154   : > { %v714_v28 = vld [vmem:[#allocation2] sm:$0xff] }
 0x155   : > { %719 = vrot.lane.b32.xlu1 %v714_v28, %s1915_s7  ;;  %1549 = vmatpush3.xpose.msk.msra.mxu1 %vm552_vm2, %v714_v28 }
 0x156   : > { %1553 = vmatprep.subr.mxu1 %v1914_v1  ;;  %v2193_v34 = vld [vmem:[#allocation2 + $0x8] sm:$0xff] }
 0x158   : > { %1551 = vmatmul.mubr.msk.f32.vlgmr.msra.gmra.mrb[2].mxu1 %vm552_vm2, %v546_v29 }
 0x159   : > { %716 = vrot.lane.b32.xlu1 %v546_v29, %s1915_s7  ;;  %1555 = vmatprep.mubr.msk.f32.mxu1 %vm1913_vm0, %v1914_v1 }
 0x15a   : > { %1554 = vmatpush3.msra.mxu1 %v2193_v34 }
 0x15b   : > { %1558 = vmatprep.subr.mxu1 %v1914_v1 }
 0x15d   : > { %891 = vrot.lane.b32.xlu1 %v546_v29, %s1916_s9 }
 0x161   : > { %1069 = vrot.lane.b32.xlu1 %v714_v28, %s1917_s11 }
 0x165   : > { %1066 = vrot.lane.b32.xlu1 %v546_v29, %s1917_s11  ;;  %v1241_v29 = vld [vmem:[#allocation9 + $0x8] sm:$0xff] }
 0x1c7   : > { %v720_v43 = vpop.permute.xlu1 %719 }
 0x1cb   : > { %v717_v44 = vpop.permute.xlu1 %716 }
 0x1cf   : > { %v892_v45 = vpop.permute.xlu1 %891 }
 0x1d3   : > { %v1070_v48 = vpop.permute.xlu1 %1069 }
 0x1d7   : > { %v1067_v50 = vpop.permute.xlu1 %1066 }
 0x22b   : > { %v625_v35 = vpop.f32.mrb[2].mxu1 }
 0x22c   : > { %v1552_v36 = vpop.f32.mrb[3].mxu1  ;;  %v629_v37 = vsel %vm552_vm2, %v625_v35, -inf }
 0x22d   : > { %630 = vmax.xlane.f32.xlu0 %v629_v37 }
 0x2ba   : > { %v631_v38 = vpop.xlane.xlu0 %630 }
 0x2bb   : > { %v632_v39 = vsub.f32 %v625_v35, %v631_v38 }
 0x2bd   : > { %v633_v40 = vmul.f32 1.442695, %v632_v39 }
 0x2bf   : > { %1717 = vpow2.f32 %v633_v40 }
 0x2c9   : > { %v1718_v41 = vpop.eup %1717 }
 0x2ca   : > { %v635_v42 = vsel %vm552_vm2, %v1718_v41, 0.0 }
 0x2cb   : > { %636 = vadd.xlane.f32.xlu0 %v635_v42  ;;  %v1473_v42 = vld [vmem:[%s2305_s4] ss:$0 sm:$0xff] }
 0x2e1   : > { %894 = vrot.lane.b32.xlu0 %v714_v28, %s1916_s9  ;;  %v1240_v28 = vld [vmem:[#allocation9] sm:$0xff] }
 0x2e2   : > { %v1618_v30 = vpack.c.bf16 %v1241_v29, %v1240_v28 }
 0x358   : > { %v637_v46 = vpop.xlane.xlu0 %636 }
 0x359   : > { %1719 = vrcp.f32 %v637_v46 }
 0x35c   : > { %v895_v47 = vpop.permute.xlu0 %894 }
 0x35d   : > { %1569 = vmatpush3.xpose.msk.msra.mxu0 %vm552_vm2, %v895_v47 }
 0x35e   : > { %1578 = vmatprep.subr.mxu0 %v1914_v1 }
 0x360   : > { %1571 = vmatmul.mubr.msk.f32.vlgmr.msra.gmra.mrb[4].mxu0 %vm552_vm2, %v892_v45 }
 0x361   : > { %1579 = vmatpush3.xpose.msk.msra.mxu0 %vm552_vm2, %v1070_v48  ;;  %1580 = vmatprep.mubr.msk.f32.mxu0 %vm1913_vm0, %v1914_v1 }
 0x362   : > { %1617 = vmatprep.subr.bf16.mxu0 %v1912_v0 }
 0x363   : > { %v1720_v49 = vpop.eup %1719 }
 0x364   : > { %v639_v51 = vmul.f32 %v1720_v49, %v1718_v41  ;;  %1581 = vmatmul.mubr.msk.f32.vlgmr.msra.gmra.mrb[6].mxu0 %vm552_vm2, %v1067_v50 }
 0x365   : > { %1596 = vmatprep.mubr.msk.f32.mxu0 %vm1913_vm0, %v1914_v1  ;;  %1619 = vmatpush3.bf16.msra.mxu0 %v1618_v30 }
 0x366   : > { %1556 = vmatmul.mubr.msk.f32.vlgmr.msra.gmra.mrb[4].mxu1 %vm552_vm2, %v639_v51  ;;  %1620 = vmatprep.subr.bf16.mxu0 %v1912_v0 }
 0x367   : > { %1559 = vmatpush3.xpose.msk.msra.mxu1 %vm552_vm2, %v720_v43  ;;  %1560 = vmatprep.mubr.msk.f32.mxu1 %vm1913_vm0, %v1914_v1 }
 0x368   : > { %1563 = vmatprep.subr.mxu1 %v1914_v1 }
 0x369   : > { %1622 = vmatpush3.bf16.msra.mxu0 %v1621_v33 }
 0x36a   : > { %1561 = vmatmul.mubr.msk.f32.vlgmr.msra.gmra.mrb[6].mxu1 %vm552_vm2, %v717_v44 }
 0x36b   : > { %1565 = vmatprep.mubr.msk.f32.mxu1 %vm1913_vm0, %v1914_v1 }
 0x433   : > { %v966_v52 = vpop.f32.mrb[4].mxu0 }
 0x434   : > { %v1572_v53 = vpop.f32.mrb[5].mxu0  ;;  %v970_v54 = vsel %vm552_vm2, %v966_v52, -inf }
 0x435   : > { %971 = vmax.xlane.f32.xlu0 %v970_v54 }
 0x437   : > { %v1141_v55 = vpop.f32.mrb[6].mxu0 }
 0x438   : > { %v1582_v56 = vpop.f32.mrb[7].mxu0  ;;  %v1145_v62 = vsel %vm552_vm2, %v1141_v55, -inf }
 0x439   : > { %v709_v57 = vpop.f32.mrb[4].mxu1 }
 0x43a   : > { %713 = vst.msk [vmem:[#allocation3] sm:$0xff] %vm552_vm2, %v709_v57  ;;  %v1557_v58 = vpop.f32.mrb[5].mxu1 }
 0x43d   : > { %v791_v59 = vpop.f32.mrb[6].mxu1 }
 0x43e   : > { %v1562_v60 = vpop.f32.mrb[7].mxu1  ;;  %v795_v61 = vsel %vm552_vm2, %v791_v59, -inf }
 0x43f   : > { %796 = vmax.xlane.f32.xlu1 %v795_v61 }
 0x443   : > { %1146 = vmax.xlane.f32.xlu1 %v1145_v62 }
 0x4c2   : > { %v972_v63 = vpop.xlane.xlu0 %971 }
 0x4c3   : > { %v973_v2 = vsub.f32 %v966_v52, %v972_v63 }
 0x4c5   : > { %v974_v3 = vmul.f32 1.442695, %v973_v2 }
 0x4c7   : > { %1721 = vpow2.f32 %v974_v3 }
 0x4cc   : > { %v797_v4 = vpop.xlane.xlu1 %796 }
 0x4cd   : > { %v798_v12 = vsub.f32 %v791_v59, %v797_v4 }
 0x4cf   : > { %v799_v13 = vmul.f32 1.442695, %v798_v12 }
 0x4d0   : > { %v1147_v5 = vpop.xlane.xlu1 %1146 }
 0x4d1   : > { %v1722_v6 = vpop.eup %1721  ;;  %v1148_v7 = vsub.f32 %v1141_v55, %v1147_v5 }
 0x4d2   : > { %v976_v8 = vsel %vm552_vm2, %v1722_v6, 0.0 }
 0x4d3   : > { %v1149_v9 = vmul.f32 1.442695, %v1148_v7  ;;  %977 = vadd.xlane.f32.xlu0 %v976_v8 }
 0x4d5   : > { %1723 = vpow2.f32 %v1149_v9 }
 0x4d6   : > { %1725 = vpow2.f32 %v799_v13 }
 0x4df   : > { %v1724_v10 = vpop.eup %1723 }
 0x4e0   : > { %v1151_v11 = vsel %vm552_vm2, %v1724_v10, 0.0  ;;  %v1726_v14 = vpop.eup %1725 }
 0x4e1   : > { %1152 = vadd.xlane.f32.xlu1 %v1151_v11  ;;  %v801_v15 = vsel %vm552_vm2, %v1726_v14, 0.0 }
 0x4e9   : > { %807 = vrot.lane.b32.xlu0 %v2193_v34, %s1915_s7 }
 0x4f2   : > { %982 = vrot.lane.b32.xlu1 %v2193_v34, %s1916_s9 }
 0x516   : > { %802 = vadd.xlane.f32.xlu1 %v801_v15 }
 0x527   : > { %1157 = vrot.lane.b32.xlu1 %v2193_v34, %s1917_s11  ;;  %s2251_s11 = scalar_lea.hbm %s2306_s5, %s1476_s28 }
 0x560   : > { %v978_v16 = vpop.xlane.xlu0 %977 }
 0x564   : > { %v808_v17 = vpop.permute.xlu0 %807 }
 0x565   : > { %1564 = vmatpush3.msra.mxu1 %v808_v17 }
 0x566   : > { %1573 = vmatprep.subr.mxu1 %v1914_v1 }
 0x56e   : > { %v1153_v18 = vpop.xlane.xlu1 %1152 }
 0x572   : > { %v983_v19 = vpop.permute.xlu1 %982 }
 0x5a3   : > { %v803_v20 = vpop.xlane.xlu1 %802 }
 0x5a4   : > { %1727 = vrcp.f32 %v803_v20 }
 0x5a5   : > { %1729 = vrcp.f32 %v978_v16 }
 0x5a6   : > { %1731 = vrcp.f32 %v1153_v18 }
 0x5a7   : > { %v1158_v26 = vpop.permute.xlu1 %1157 }
 0x5ae   : > { %v1728_v21 = vpop.eup %1727 }
 0x5af   : > { %v805_v22 = vmul.f32 %v1728_v21, %v1726_v14  ;;  %v1730_v23 = vpop.eup %1729 }
 0x5b0   : > { %v980_v24 = vmul.f32 %v1730_v23, %v1722_v6  ;;  %v1732_v25 = vpop.eup %1731 }
 0x5b1   : > { %1566 = vmatmul.mubr.msk.f32.vlgmr.msra.gmra.mrb[8].mxu1 %vm552_vm2, %v805_v22  ;;  %v1155_v27 = vmul.f32 %v1732_v25, %v1724_v10 }
 0x5b2   : > { %1574 = vmatpush3.msra.mxu1 %v983_v19  ;;  %1575 = vmatprep.mubr.msk.f32.mxu1 %vm1913_vm0, %v1914_v1 }
 0x5b3   : > { %1583 = vmatprep.subr.mxu1 %v1914_v1 }
 0x5b5   : > { %1576 = vmatmul.mubr.msk.f32.vlgmr.msra.gmra.mrb[10].mxu1 %vm552_vm2, %v980_v24 }
 0x5b6   : > { %1584 = vmatpush3.msra.mxu1 %v1158_v26  ;;  %1585 = vmatprep.mubr.msk.f32.mxu1 %vm1913_vm0, %v1914_v1 }
 0x5b9   : > { %1586 = vmatmul.mubr.msk.f32.vlgmr.msra.gmra.mrb[12].mxu1 %vm552_vm2, %v1155_v27 }
 0x684   : > { %v879_v34 = vpop.f32.mrb[8].mxu1 }
 0x685   : > { %884 = vrot.lane.b32.xlu0 %v879_v34, %s1918_s14  ;;  %v1567_v35 = vpop.f32.mrb[9].mxu1  ;;  %s1825_s14 = scalar_lea.vmem %s1824_s27, 256 }
 0x686   : > { %p1827_p5 = scmp.lt.s32.totalorder %s1825_s14, %s1819_s21 }
 0x688   : > { %v1054_v36 = vpop.f32.mrb[10].mxu1  ;;  %p1828_p9 = por %p1827_p5, %p1826_p3 }
 0x689   : > { %1059 = vrot.lane.b32.xlu1 %v1054_v36, %s1919_s10  ;;  %v1577_v1 = vpop.f32.mrb[11].mxu1 }
 0x68a   : > { %p1829_p11 = pnand %p1828_p9, %p1822_p10 }
 0x68c   : > { %v1229_v37 = vpop.f32.mrb[12].mxu1 }
 0x68d   : > { %1234 = vrot.lane.b32.xlu0 %v1229_v37, %s1920_s16  ;;  %v1587_v38 = vpop.f32.mrb[13].mxu1 }
 0x6f7   : > { %v885_v39 = vpop.permute.xlu0 %884 }
 0x6f8   : > { %888 = vst.msk [vmem:[#allocation3] sm:$0xff] %vm887_vm3, %v885_v39 }
 0x6fb   : > { %v1060_v0 = vpop.permute.xlu1 %1059 }
 0x6fc   : > { %1063 = vst.msk [vmem:[#allocation3] sm:$0xff] %vm1062_vm4, %v1060_v0 }
 0x6ff   : > { %v1235_v40 = vpop.permute.xlu0 %1234 }
 0x700   : > { %1238 = vst.msk [vmem:[#allocation3] sm:$0xff] %vm1237_vm5, %v1235_v40 }
 0x707   : > { %v1239_v41 = vld [vmem:[#allocation3] sm:$0xff] }
 0x708   : > { %1597 = vmatmul.mubr.msk.f32.vlgmr.msra.gmra.mrb[8].mxu0 %vm301_vm1, %v1239_v41 }
 0x7db   : > { %v1320_v43 = vpop.f32.mrb[8].mxu0 }
 0x7dc   : > { %v1321_v44 = vadd.f32 %v1473_v42, %v1320_v43  ;;  %v1598_v45 = vpop.f32.mrb[9].mxu0 }
 0x7de   : > { %1324 = vst.msk [vmem:[%s282_s30] sm:$0xff] %vm301_vm1, %v1321_v44 }
 0x7df   : > { %1832 = shalt.err (!%p1829_p11)
}
 0x7e0   : > { %s1833_s13 = scalar_lea.hbm %s2251_s11, 128  ;;  %s1837_s17 = scalar_lea.hbm %s2306_s5, 256 }
 0x7e1   : > { %p1834_p0 = scmp.ne.s32.totalorder %s2251_s11, %s1833_s13  ;;  %p1838_p6 = scmp.lt.u32.totalorder %s2251_s11, %s2306_s5 }
 0x7e2   : > { %p1839_p7 = scmp.lt.u32.totalorder %s1837_s17, %s1833_s13  ;;  %p1841_p8 = scmp.lt.u32.totalorder %s1833_s13, %s2251_s11 }
 0x7e3   : > { %p1835_p4 = pnand %p1834_p0, %p2321_p12 }
 0x7e4   : > { %p1840_p2 = por %p1839_p7, %p1838_p6 }
 0x7e5   : > { %p1836_p13 = pneg %p1835_p4 }
 0x7e6   : > { %p1842_p1 = por %p1841_p8, %p1840_p2 }
 0x7e8   : > { %p1843_p10 = pnand %p1842_p1, %p1836_p13 }
 0x7ea   : > { %1846 = shalt.err (!%p1843_p10)
}
 0x7eb   : > { %1633 = dma.vmem_to_hbm [thread:$0]  (%p2321_p12), %s2253_s24, 128, %s2251_s11, %s1326_s15  }
 0x7ec PF: > { %s1352_s30 = sand.u32 1, %s1885_s18   ;;  %p2322_p3 = scmp.ne.s32.totalorder %s2314_s29, 0 }
 0x7ed   : > { %p2323_p5 = scmp.ge.s32.totalorder %s1905_s23, 2  ;;  %s1353_s7 = scalar_lea.sflag [#allocation6], %s1352_s30 }
 0x7ef   : > { %p1647_p9 = pnand %p2323_p5, %p2322_p3 }
 0x7f1   : > { %1880 = dma.done.wait (!%p1647_p9), %s1353_s7, 128  }
 0x7f2   : > { %1882 = vsyncadd (!%p1647_p9), %s1353_s7, 4294967168  ;;  %s22_s23 = sadd.s32 1, %s1905_s23   ;;  %s2324_s18 = smov %s1889_s19 }
 0x7f3   : > { %p19_p11 = scmp.ge.s32.totalorder %s22_s23, 4   ;;  %s2325_s19 = smov %s1893_s20 }
 0x7f4   : > { %s2326_s20 = smov %s2094_s6  ;;  %s2327_s21 = smov %s1901_s22 }
 0x7f5   : > { %s2328_s22 = smov %s2330_s12  ;;  %21 = sbr.rel (!%p19_p11) target bundleno = 7 (0x7), region = 104 }
 0x7fc   :  { %1358 = vsyncpa [#allocation5], 1 }
 0x7fd   :  { %1360 = vsyncpa [#allocation5 + $0x1], 1 }
 0x7fe   :  { %1361 = vsyncpa [#allocation8], 1 }
 0x7ff   :  { %1362 = vsyncpa [#allocation6], 1 }
 0x800   :  { %1364 = vsyncpa [#allocation6 + $0x1], 1 }

</bundles_post_ra>
